<compile_context>
chip_gen: v7x
topology: tpu7x:2x2x1
jax: 0.10.0
libtpu: 0.0.40
codegen_flags: <defaults>
</compile_context>

<pallas_src>
import functools

import jax
import jax.numpy as jnp
from jax import lax
from jax.experimental import pallas as pl
from jax.experimental.pallas import tpu as pltpu

EPS = 1e-5  # nn.BatchNorm2d default eps


def _round_up(x, m):
    return (x + m - 1) // m * m


def _fused_kernel(x_ref, w_ref, mask_ref, gamma_ref, beta_ref,   # inputs
                  out_ref,                                        # output (resident)
                  sum_ref, sq_ref,                                # scratch
                  *, c_in, kh, kw, w_in, q_pad, b_img, inv_p):
    """Conv (MXU) + batch-stats accumulation each step; BN fold + ReLU on the last step.

    x_ref block : (B, C_in, flat_len) bf16 -- flat (H*W) images, padded so every
                  shifted tap window and the lane pad stay in range.
    w_ref       : (C_out, K) bf16, K = C_in*KH*KW in PyTorch flatten order.
    mask_ref    : (1, B*q_pad) f32 {0,1} -- valid conv columns (precomputed).
    out_ref     : (N_pad, C_out, q_pad) f32, resident across the whole grid.
    """
    step = pl.program_id(0)
    n_steps = pl.num_programs(0)

    @pl.when(step == 0)
    def _init():
        sum_ref[...] = jnp.zeros_like(sum_ref)
        sq_ref[...] = jnp.zeros_like(sq_ref)

    # ---- conv of this chunk: register-built patches, one wide MXU matmul ----
    x_blk = x_ref[...]                                   # (B, C_in, flat_len) bf16
    per_img = []
    for b in range(b_img):
        xb = x_blk[b]                                    # (C_in, flat_len)
        rows = [xb[c:c + 1, i * w_in + j: i * w_in + j + q_pad]
                for c in range(c_in) for i in range(kh) for j in range(kw)]
        per_img.append(jnp.concatenate(rows, axis=0))    # (K, q_pad) bf16
    patches = jnp.concatenate(per_img, axis=1)           # (K, B*q_pad) bf16
    y = jnp.dot(w_ref[...], patches,
                preferred_element_type=jnp.float32)      # (C_out, B*q_pad) f32

    # ---- per-channel batch statistics over valid columns only ----
    ym = y * mask_ref[...]
    sum_ref[...] += jnp.sum(ym, axis=1, keepdims=True)   # (C_out, 1)
    sq_ref[...] += jnp.sum(ym * ym, axis=1, keepdims=True)

    # ---- stash this chunk's conv output into the resident output block ----
    img0 = step * b_img
    for b in range(b_img):
        out_ref[img0 + b] = y[:, b * q_pad:(b + 1) * q_pad]   # (C_out, q_pad)

    # ---- final step: fold stats -> scale/shift, normalize + ReLU in place ----
    @pl.when(step == n_steps - 1)
    def _finalize():
        mean = sum_ref[...] * inv_p
        var = jnp.maximum(sq_ref[...] * inv_p - mean * mean, 0.0)  # biased var, clamped
        scale = gamma_ref[...] * lax.rsqrt(var + EPS)              # (C_out, 1)
        shift = beta_ref[...] - mean * scale
        c_out = scale.shape[0]
        y_all = out_ref[...]                                        # (N_pad, C_out, q_pad)
        out_ref[...] = jnp.maximum(
            y_all * scale.reshape(1, c_out, 1) + shift.reshape(1, c_out, 1), 0.0)


def conv_bn_relu_2d(x_nchw, conv_w, conv_b, bn_gamma, bn_beta):
    """Forward of ConvBNRelu2D (stride=1, padding=0, training-mode batch stats).

    x_nchw: (N, C_in, H, W);  conv_w: (C_out, C_in, KH, KW);
    conv_b / bn_gamma / bn_beta: (C_out,).
    conv_b is unused: BatchNorm's mean subtraction cancels the bias exactly.
    """
    del conv_b
    n, c_in, h, w_in = x_nchw.shape
    c_out, c_in_w, kh, kw = conv_w.shape
    assert c_in == c_in_w
    oh, ow = h - kh + 1, w_in - kw + 1
    assert oh > 0 and ow > 0
    k_dim = c_in * kh * kw
    q_len = oh * w_in                               # flat outputs per image (incl. straddle cols)
    q_pad = _round_up(q_len, 128)                   # lane-dense column count
    max_off = (kh - 1) * w_in + (kw - 1)            # largest flat tap shift
    flat_len = _round_up(max_off + q_pad, 128)      # padded flat image length
    p_total = n * oh * ow                           # BatchNorm reduction size

    # Images per grid step: make the matmul RHS >= ~512 lanes per weight push.
    b_img = max(1, min(n, pl.cdiv(512, q_pad)))
    n_pad = _round_up(n, b_img)
    n_steps = n_pad // b_img

    # Fused-path VMEM gate: whole-batch conv output resident + double-buffered x.
    resident_bytes = n_pad * c_out * q_pad * 4 + 2 * b_img * c_in * flat_len * 2
    assert resident_bytes < 24 * 1024 * 1024, resident_bytes  # TODO(synk): two-pass fallback

    # Flatten (H, W) per channel (metadata), pad the flat axis, pad the batch,
    # feed bf16 (the MXU operands are bf16 anyway -> half the HBM bytes).
    x_flat = x_nchw.reshape(n, c_in, h * w_in).astype(jnp.bfloat16)
    x_flat = jnp.pad(x_flat, ((0, n_pad - n), (0, 0), (0, flat_len - h * w_in)))

    # PyTorch's natural weight flatten (C_out, C_in*KH*KW) matches the in-kernel
    # tap order (c outer, then kh, then kw).
    w_mat = conv_w.reshape(c_out, k_dim).astype(jnp.bfloat16)
    gamma_col = bn_gamma.reshape(c_out, 1).astype(jnp.float32)
    beta_col = bn_beta.reshape(c_out, 1).astype(jnp.float32)

    # Constant validity mask (hoisted out of the kernel): column q of an image's
    # segment is a real conv output iff q < OH*W and (q mod W) < OW.
    qq = jnp.arange(q_pad, dtype=jnp.int32)
    valid = ((qq < q_len) & ((qq % w_in) < ow)).astype(jnp.float32)
    mask = jnp.tile(valid, (b_img,)).reshape(1, b_img * q_pad)

    conv_flops = 2 * n_pad * c_out * q_pad * k_dim

    out_padded = pl.pallas_call(
        functools.partial(_fused_kernel, c_in=c_in, kh=kh, kw=kw, w_in=w_in,
                          q_pad=q_pad, b_img=b_img, inv_p=1.0 / p_total),
        out_shape=jax.ShapeDtypeStruct((n_pad, c_out, q_pad), jnp.float32),
        grid_spec=pltpu.PrefetchScalarGridSpec(
            num_scalar_prefetch=0,
            grid=(n_steps,),
            in_specs=[
                pl.BlockSpec((b_img, c_in, flat_len), lambda s: (s, 0, 0)),
                pl.BlockSpec((c_out, k_dim), lambda s: (0, 0)),
                pl.BlockSpec((1, b_img * q_pad), lambda s: (0, 0)),
                pl.BlockSpec((c_out, 1), lambda s: (0, 0)),
                pl.BlockSpec((c_out, 1), lambda s: (0, 0)),
            ],
            # Constant index map -> the whole output stays resident in VMEM across
            # the grid (accumulator pattern); written back to HBM once at the end.
            out_specs=pl.BlockSpec((n_pad, c_out, q_pad), lambda s: (0, 0, 0)),
            scratch_shapes=[pltpu.VMEM((c_out, 1), jnp.float32),
                            pltpu.VMEM((c_out, 1), jnp.float32)]),
        compiler_params=pltpu.CompilerParams(
            # Grid-carried reduction + resident output -> "arbitrary".
            dimension_semantics=("arbitrary",)),
        cost_estimate=pl.CostEstimate(
            flops=conv_flops + 7 * n_pad * c_out * q_pad,
            transcendentals=c_out,
            bytes_accessed=(n_pad * c_in * flat_len * 2 + c_out * k_dim * 2
                            + b_img * q_pad * 4 + 4 * c_out * 4
                            + n_pad * c_out * q_pad * 4)),
    )(x_flat, w_mat, mask, gamma_col, beta_col)

    # Drop batch pad + lane pad + the KW-1 row-straddle columns; the reshape to
    # (OH, W) is pure metadata -- no transposes anywhere.
    return out_padded[:n, :, :q_len].reshape(n, c_out, oh, w_in)[:, :, :, :ow]


def _reference(x_nchw, conv_w, conv_b, bn_gamma, bn_beta):
    """Pure-JAX reference; conv inputs rounded to bf16 to match the kernel's MXU path."""
    xr = x_nchw.astype(jnp.bfloat16).astype(jnp.float32)
    wr = conv_w.astype(jnp.bfloat16).astype(jnp.float32)
    y = lax.conv_general_dilated(
        xr, wr, window_strides=(1, 1), padding="VALID",
        dimension_numbers=("NCHW", "OIHW", "NCHW"))
    y = y + conv_b.reshape(1, -1, 1, 1)
    mean = jnp.mean(y, axis=(0, 2, 3), keepdims=True)
    var = jnp.mean((y - mean) ** 2, axis=(0, 2, 3), keepdims=True)
    y = (y - mean) * lax.rsqrt(var + EPS)
    y = y * bn_gamma.reshape(1, -1, 1, 1) + bn_beta.reshape(1, -1, 1, 1)
    return jnp.maximum(y, 0.0)


if __name__ == "__main__":
    # Small shapes consistent with the module defaults (in_channels=1,
    # out_channels=24, spatial kernel 3x3, stride=1, padding=0).
    N, C_IN, H, W = 2, 1, 16, 16
    C_OUT, KH, KW = 24, 3, 3

    key = jax.random.PRNGKey(0)
    k_x, k_w, k_b, k_g, k_be = jax.random.split(key, 5)

    x = jax.random.normal(k_x, (N, C_IN, H, W), dtype=jnp.float32)
    conv_w = jax.random.normal(k_w, (C_OUT, C_IN, KH, KW), dtype=jnp.float32) * 0.1
    conv_b = jax.random.normal(k_b, (C_OUT,), dtype=jnp.float32) * 0.1
    # PyTorch BatchNorm2d defaults are gamma=1, beta=0; perturb deterministically
    # so the affine path is exercised.
    bn_gamma = 1.0 + 0.1 * jax.random.normal(k_g, (C_OUT,), dtype=jnp.float32)
    bn_beta = 0.1 * jax.random.normal(k_be, (C_OUT,), dtype=jnp.float32)

    fwd = jax.jit(conv_bn_relu_2d)
    out = jax.block_until_ready(fwd(x, conv_w, conv_b, bn_gamma, bn_beta))

    ref = _reference(x, conv_w, conv_b, bn_gamma, bn_beta)
    assert out.shape == (N, C_OUT, H - KH + 1, W - KW + 1), out.shape
    max_err = float(jnp.max(jnp.abs(out - ref)))
    assert jnp.allclose(out, ref, atol=1e-3, rtol=1e-3), f"max|err|={max_err}"

    print("KERNEL_OK")
</pallas_src>

<mosaic_0001>
module attributes {stable_mosaic.version = 11 : i64} {
  func.func @_fused_kernel(%arg0: i32, %arg1: memref<2x1x384xbf16, #tpu.memory_space<vmem>>, %arg2: memref<24x9xbf16, #tpu.memory_space<vmem>>, %arg3: memref<1x512xf32, #tpu.memory_space<vmem>>, %arg4: memref<24x1xf32, #tpu.memory_space<vmem>>, %arg5: memref<24x1xf32, #tpu.memory_space<vmem>>, %arg6: memref<2x24x256xf32, #tpu.memory_space<vmem>>, %arg7: memref<24x1xf32, #tpu.memory_space<vmem>>, %arg8: memref<24x1xf32, #tpu.memory_space<vmem>>) attributes {dimension_semantics = [#tpu.dimension_semantics<arbitrary>], iteration_bounds = array<i64: 1>, scalar_prefetch = 0 : i64, scratch_operands = 2 : i64, tpu.core_type = #tpu.core_type<tc>, window_params = [{transform_indices = @transform_0, window_bounds = array<i64: 2, 1, 384>}, {pipeline_mode = #tpu.pipeline_mode<synchronous>, transform_indices = @transform_1, window_bounds = array<i64: 24, 9>}, {pipeline_mode = #tpu.pipeline_mode<synchronous>, transform_indices = @transform_2, window_bounds = array<i64: 1, 512>}, {pipeline_mode = #tpu.pipeline_mode<synchronous>, transform_indices = @transform_3, window_bounds = array<i64: 24, 1>}, {pipeline_mode = #tpu.pipeline_mode<synchronous>, transform_indices = @transform_4, window_bounds = array<i64: 24, 1>}, {pipeline_mode = #tpu.pipeline_mode<synchronous>, transform_indices = @transform_5, window_bounds = array<i64: 2, 24, 256>}]} {
    %c0_i32 = arith.constant 0 : i32
    %0 = arith.cmpi eq, %arg0, %c0_i32 : i32
    %1 = arith.extui %0 : i1 to i32
    %c0_i32_0 = arith.constant 0 : i32
    %2 = arith.cmpi ne, %1, %c0_i32_0 : i32
    scf.if %2 {
      %cst_24 = arith.constant 0.000000e+00 : f32
      %61 = vector.broadcast %cst_24 : f32 to vector<24x1xf32>
      %c0_25 = arith.constant 0 : index
      %c0_26 = arith.constant 0 : index
      %62 = vector.load %arg7[%c0_25, %c0_26] : memref<24x1xf32, #tpu.memory_space<vmem>>, vector<24x1xf32>
      tpu.vector_store %arg7[%c0_25, %c0_26], %61 {strides = array<i32>} : memref<24x1xf32, #tpu.memory_space<vmem>>, vector<24x1xf32>,
      %cst_27 = arith.constant 0.000000e+00 : f32
      %63 = vector.broadcast %cst_27 : f32 to vector<24x1xf32>
      %c0_28 = arith.constant 0 : index
      %c0_29 = arith.constant 0 : index
      %64 = vector.load %arg8[%c0_28, %c0_29] : memref<24x1xf32, #tpu.memory_space<vmem>>, vector<24x1xf32>
      tpu.vector_store %arg8[%c0_28, %c0_29], %63 {strides = array<i32>} : memref<24x1xf32, #tpu.memory_space<vmem>>, vector<24x1xf32>,
    } else {
    }
    %c0 = arith.constant 0 : index
    %c0_1 = arith.constant 0 : index
    %c0_2 = arith.constant 0 : index
    %3 = vector.load %arg1[%c0, %c0_1, %c0_2] : memref<2x1x384xbf16, #tpu.memory_space<vmem>>, vector<2x1x384xbf16>
    %4 = vector.extract_strided_slice %3 {offsets = [0, 0, 0], sizes = [1, 1, 384], strides = [1, 1, 1]} : vector<2x1x384xbf16> to vector<1x1x384xbf16>
    %5 = vector.shape_cast %4 : vector<1x1x384xbf16> to vector<1x384xbf16>
    %6 = vector.extract_strided_slice %5 {offsets = [0, 0], sizes = [1, 256], strides = [1, 1]} : vector<1x384xbf16> to vector<1x256xbf16>
    %7 = vector.extract_strided_slice %5 {offsets = [0, 1], sizes = [1, 256], strides = [1, 1]} : vector<1x384xbf16> to vector<1x256xbf16>
    %8 = vector.extract_strided_slice %5 {offsets = [0, 2], sizes = [1, 256], strides = [1, 1]} : vector<1x384xbf16> to vector<1x256xbf16>
    %9 = vector.extract_strided_slice %5 {offsets = [0, 16], sizes = [1, 256], strides = [1, 1]} : vector<1x384xbf16> to vector<1x256xbf16>
    %10 = vector.extract_strided_slice %5 {offsets = [0, 17], sizes = [1, 256], strides = [1, 1]} : vector<1x384xbf16> to vector<1x256xbf16>
    %11 = vector.extract_strided_slice %5 {offsets = [0, 18], sizes = [1, 256], strides = [1, 1]} : vector<1x384xbf16> to vector<1x256xbf16>
    %12 = vector.extract_strided_slice %5 {offsets = [0, 32], sizes = [1, 256], strides = [1, 1]} : vector<1x384xbf16> to vector<1x256xbf16>
    %13 = vector.extract_strided_slice %5 {offsets = [0, 33], sizes = [1, 256], strides = [1, 1]} : vector<1x384xbf16> to vector<1x256xbf16>
    %14 = vector.extract_strided_slice %5 {offsets = [0, 34], sizes = [1, 256], strides = [1, 1]} : vector<1x384xbf16> to vector<1x256xbf16>
    %15 = tpu.concatenate %6, %7, %8, %9, %10, %11, %12, %13, %14 in 0 : vector<1x256xbf16>, vector<1x256xbf16>, vector<1x256xbf16>, vector<1x256xbf16>, vector<1x256xbf16>, vector<1x256xbf16>, vector<1x256xbf16>, vector<1x256xbf16>, vector<1x256xbf16> -> vector<9x256xbf16>
    %16 = vector.extract_strided_slice %3 {offsets = [1, 0, 0], sizes = [1, 1, 384], strides = [1, 1, 1]} : vector<2x1x384xbf16> to vector<1x1x384xbf16>
    %17 = vector.shape_cast %16 : vector<1x1x384xbf16> to vector<1x384xbf16>
    %18 = vector.extract_strided_slice %17 {offsets = [0, 0], sizes = [1, 256], strides = [1, 1]} : vector<1x384xbf16> to vector<1x256xbf16>
    %19 = vector.extract_strided_slice %17 {offsets = [0, 1], sizes = [1, 256], strides = [1, 1]} : vector<1x384xbf16> to vector<1x256xbf16>
    %20 = vector.extract_strided_slice %17 {offsets = [0, 2], sizes = [1, 256], strides = [1, 1]} : vector<1x384xbf16> to vector<1x256xbf16>
    %21 = vector.extract_strided_slice %17 {offsets = [0, 16], sizes = [1, 256], strides = [1, 1]} : vector<1x384xbf16> to vector<1x256xbf16>
    %22 = vector.extract_strided_slice %17 {offsets = [0, 17], sizes = [1, 256], strides = [1, 1]} : vector<1x384xbf16> to vector<1x256xbf16>
    %23 = vector.extract_strided_slice %17 {offsets = [0, 18], sizes = [1, 256], strides = [1, 1]} : vector<1x384xbf16> to vector<1x256xbf16>
    %24 = vector.extract_strided_slice %17 {offsets = [0, 32], sizes = [1, 256], strides = [1, 1]} : vector<1x384xbf16> to vector<1x256xbf16>
    %25 = vector.extract_strided_slice %17 {offsets = [0, 33], sizes = [1, 256], strides = [1, 1]} : vector<1x384xbf16> to vector<1x256xbf16>
    %26 = vector.extract_strided_slice %17 {offsets = [0, 34], sizes = [1, 256], strides = [1, 1]} : vector<1x384xbf16> to vector<1x256xbf16>
    %27 = tpu.concatenate %18, %19, %20, %21, %22, %23, %24, %25, %26 in 0 : vector<1x256xbf16>, vector<1x256xbf16>, vector<1x256xbf16>, vector<1x256xbf16>, vector<1x256xbf16>, vector<1x256xbf16>, vector<1x256xbf16>, vector<1x256xbf16>, vector<1x256xbf16> -> vector<9x256xbf16>
    %28 = tpu.concatenate %15, %27 in 1 : vector<9x256xbf16>, vector<9x256xbf16> -> vector<9x512xbf16>
    %c0_3 = arith.constant 0 : index
    %c0_4 = arith.constant 0 : index
    %29 = vector.load %arg2[%c0_3, %c0_4] : memref<24x9xbf16, #tpu.memory_space<vmem>>, vector<24x9xbf16>
    %cst = arith.constant dense<0.000000e+00> : vector<24x512xf32>
    %30 = tpu.matmul %29, %28, %cst {dimension_numbers = #tpu.dot_dimension_numbers<[1], [0], [0], [1], [0, 0, 1, 1], [], []>} : vector<24x9xbf16>, vector<9x512xbf16>, vector<24x512xf32> -> vector<24x512xf32>
    %c0_5 = arith.constant 0 : index
    %c0_6 = arith.constant 0 : index
    %31 = vector.load %arg3[%c0_5, %c0_6] : memref<1x512xf32, #tpu.memory_space<vmem>>, vector<1x512xf32>
    %32 = vector.broadcast %31 : vector<1x512xf32> to vector<24x512xf32>
    %33 = arith.mulf %30, %32 : vector<24x512xf32>
    %c0_7 = arith.constant 0 : index
    %c0_8 = arith.constant 0 : index
    %34 = vector.load %arg7[%c0_7, %c0_8] : memref<24x1xf32, #tpu.memory_space<vmem>>, vector<24x1xf32>
    %cst_9 = arith.constant dense<0.000000e+00> : vector<24xf32>
    %35 = vector.multi_reduction <add>, %33, %cst_9 [1] : vector<24x512xf32> to vector<24xf32>
    %36 = vector.shape_cast %35 : vector<24xf32> to vector<24x1xf32>
    %37 = arith.addf %34, %36 : vector<24x1xf32>
    %c0_10 = arith.constant 0 : index
    %c0_11 = arith.constant 0 : index
    %38 = vector.load %arg7[%c0_10, %c0_11] : memref<24x1xf32, #tpu.memory_space<vmem>>, vector<24x1xf32>
    tpu.vector_store %arg7[%c0_10, %c0_11], %37 {strides = array<i32>} : memref<24x1xf32, #tpu.memory_space<vmem>>, vector<24x1xf32>,
    %c0_12 = arith.constant 0 : index
    %c0_13 = arith.constant 0 : index
    %39 = vector.load %arg8[%c0_12, %c0_13] : memref<24x1xf32, #tpu.memory_space<vmem>>, vector<24x1xf32>
    %40 = arith.mulf %33, %33 : vector<24x512xf32>
    %cst_14 = arith.constant dense<0.000000e+00> : vector<24xf32>
    %41 = vector.multi_reduction <add>, %40, %cst_14 [1] : vector<24x512xf32> to vector<24xf32>
    %42 = vector.shape_cast %41 : vector<24xf32> to vector<24x1xf32>
    %43 = arith.addf %39, %42 : vector<24x1xf32>
    %c0_15 = arith.constant 0 : index
    %c0_16 = arith.constant 0 : index
    %44 = vector.load %arg8[%c0_15, %c0_16] : memref<24x1xf32, #tpu.memory_space<vmem>>, vector<24x1xf32>
    tpu.vector_store %arg8[%c0_15, %c0_16], %43 {strides = array<i32>} : memref<24x1xf32, #tpu.memory_space<vmem>>, vector<24x1xf32>,
    %c2_i32 = arith.constant 2 : i32
    %45 = arith.muli %arg0, %c2_i32 : i32
    %46 = vector.extract_strided_slice %30 {offsets = [0, 0], sizes = [24, 256], strides = [1, 1]} : vector<24x512xf32> to vector<24x256xf32>
    %c0_i32_17 = arith.constant 0 : i32
    %47 = arith.addi %45, %c0_i32_17 : i32
    %48 = arith.index_cast %47 : i32 to index
    %c0_18 = arith.constant 0 : index
    %c0_19 = arith.constant 0 : index
    %49 = vector.load %arg6[%48, %c0_18, %c0_19] : memref<2x24x256xf32, #tpu.memory_space<vmem>>, vector<1x24x256xf32>
    %50 = vector.shape_cast %49 : vector<1x24x256xf32> to vector<24x256xf32>
    %51 = vector.shape_cast %46 : vector<24x256xf32> to vector<1x24x256xf32>
    tpu.vector_store %arg6[%48, %c0_18, %c0_19], %51 {strides = array<i32>} : memref<2x24x256xf32, #tpu.memory_space<vmem>>, vector<1x24x256xf32>,
    %52 = vector.extract_strided_slice %30 {offsets = [0, 256], sizes = [24, 256], strides = [1, 1]} : vector<24x512xf32> to vector<24x256xf32>
    %c1_i32 = arith.constant 1 : i32
    %53 = arith.addi %45, %c1_i32 : i32
    %54 = arith.index_cast %53 : i32 to index
    %c0_20 = arith.constant 0 : index
    %c0_21 = arith.constant 0 : index
    %55 = vector.load %arg6[%54, %c0_20, %c0_21] : memref<2x24x256xf32, #tpu.memory_space<vmem>>, vector<1x24x256xf32>
    %56 = vector.shape_cast %55 : vector<1x24x256xf32> to vector<24x256xf32>
    %57 = vector.shape_cast %52 : vector<24x256xf32> to vector<1x24x256xf32>
    tpu.vector_store %arg6[%54, %c0_20, %c0_21], %57 {strides = array<i32>} : memref<2x24x256xf32, #tpu.memory_space<vmem>>, vector<1x24x256xf32>,
    %c0_i32_22 = arith.constant 0 : i32
    %58 = arith.cmpi eq, %arg0, %c0_i32_22 : i32
    %59 = arith.extui %58 : i1 to i32
    %c0_i32_23 = arith.constant 0 : i32
    %60 = arith.cmpi ne, %59, %c0_i32_23 : i32
    scf.if %60 {
      %c0_24 = arith.constant 0 : index
      %c0_25 = arith.constant 0 : index
      %61 = vector.load %arg7[%c0_24, %c0_25] : memref<24x1xf32, #tpu.memory_space<vmem>>, vector<24x1xf32>
      %cst_26 = arith.constant 0.00255102036 : f32
      %62 = vector.broadcast %cst_26 : f32 to vector<24x1xf32>
      %63 = arith.mulf %61, %62 : vector<24x1xf32>
      %c0_27 = arith.constant 0 : index
      %c0_28 = arith.constant 0 : index
      %64 = vector.load %arg8[%c0_27, %c0_28] : memref<24x1xf32, #tpu.memory_space<vmem>>, vector<24x1xf32>
      %cst_29 = arith.constant 0.00255102036 : f32
      %65 = vector.broadcast %cst_29 : f32 to vector<24x1xf32>
      %66 = arith.mulf %64, %65 : vector<24x1xf32>
      %67 = arith.mulf %63, %63 : vector<24x1xf32>
      %68 = arith.subf %66, %67 : vector<24x1xf32>
      %cst_30 = arith.constant 0.000000e+00 : f32
      %69 = vector.broadcast %cst_30 : f32 to vector<24x1xf32>
      %70 = arith.maximumf %68, %69 : vector<24x1xf32>
      %c0_31 = arith.constant 0 : index
      %c0_32 = arith.constant 0 : index
      %71 = vector.load %arg4[%c0_31, %c0_32] : memref<24x1xf32, #tpu.memory_space<vmem>>, vector<24x1xf32>
      %cst_33 = arith.constant 9.99999974E-6 : f32
      %72 = vector.broadcast %cst_33 : f32 to vector<24x1xf32>
      %73 = arith.addf %70, %72 : vector<24x1xf32>
      %74 = math.rsqrt %73 : vector<24x1xf32>
      %75 = arith.mulf %71, %74 : vector<24x1xf32>
      %c0_34 = arith.constant 0 : index
      %c0_35 = arith.constant 0 : index
      %76 = vector.load %arg5[%c0_34, %c0_35] : memref<24x1xf32, #tpu.memory_space<vmem>>, vector<24x1xf32>
      %77 = arith.mulf %63, %75 : vector<24x1xf32>
      %78 = arith.subf %76, %77 : vector<24x1xf32>
      %c0_36 = arith.constant 0 : index
      %c0_37 = arith.constant 0 : index
      %c0_38 = arith.constant 0 : index
      %79 = vector.load %arg6[%c0_36, %c0_37, %c0_38] : memref<2x24x256xf32, #tpu.memory_space<vmem>>, vector<2x24x256xf32>
      %80 = vector.shape_cast %75 : vector<24x1xf32> to vector<1x24x1xf32>
      %81 = vector.broadcast %80 : vector<1x24x1xf32> to vector<2x24x256xf32>
      %82 = arith.mulf %79, %81 : vector<2x24x256xf32>
      %83 = vector.shape_cast %78 : vector<24x1xf32> to vector<1x24x1xf32>
      %84 = vector.broadcast %83 : vector<1x24x1xf32> to vector<2x24x256xf32>
      %85 = arith.addf %82, %84 : vector<2x24x256xf32>
      %cst_39 = arith.constant 0.000000e+00 : f32
      %86 = vector.broadcast %cst_39 : f32 to vector<2x24x256xf32>
      %87 = arith.maximumf %85, %86 : vector<2x24x256xf32>
      %c0_40 = arith.constant 0 : index
      %c0_41 = arith.constant 0 : index
      %c0_42 = arith.constant 0 : index
      %88 = vector.load %arg6[%c0_40, %c0_41, %c0_42] : memref<2x24x256xf32, #tpu.memory_space<vmem>>, vector<2x24x256xf32>
      tpu.vector_store %arg6[%c0_40, %c0_41, %c0_42], %87 {strides = array<i32>} : memref<2x24x256xf32, #tpu.memory_space<vmem>>, vector<2x24x256xf32>,
    } else {
    }
    return
  }
  func.func @transform_0(%arg0: i32) -> (i32, i32, i32) {
    %c0_i32 = arith.constant 0 : i32
    %c0_i32_0 = arith.constant 0 : i32
    %c0_i32_1 = arith.constant 0 : i32
    return %arg0, %c0_i32, %c0_i32_0 : i32, i32, i32
  }
  func.func @transform_1(%arg0: i32) -> (i32, i32) {
    %c0_i32 = arith.constant 0 : i32
    %c0_i32_0 = arith.constant 0 : i32
    %c0_i32_1 = arith.constant 0 : i32
    return %c0_i32, %c0_i32_0 : i32, i32
  }
  func.func @transform_2(%arg0: i32) -> (i32, i32) {
    %c0_i32 = arith.constant 0 : i32
    %c0_i32_0 = arith.constant 0 : i32
    %c0_i32_1 = arith.constant 0 : i32
    return %c0_i32, %c0_i32_0 : i32, i32
  }
  func.func @transform_3(%arg0: i32) -> (i32, i32) {
    %c0_i32 = arith.constant 0 : i32
    %c0_i32_0 = arith.constant 0 : i32
    %c0_i32_1 = arith.constant 0 : i32
    return %c0_i32, %c0_i32_0 : i32, i32
  }
  func.func @transform_4(%arg0: i32) -> (i32, i32) {
    %c0_i32 = arith.constant 0 : i32
    %c0_i32_0 = arith.constant 0 : i32
    %c0_i32_1 = arith.constant 0 : i32
    return %c0_i32, %c0_i32_0 : i32, i32
  }
  func.func @transform_5(%arg0: i32) -> (i32, i32, i32) {
    %c0_i32 = arith.constant 0 : i32
    %c0_i32_0 = arith.constant 0 : i32
    %c0_i32_1 = arith.constant 0 : i32
    %c0_i32_2 = arith.constant 0 : i32
    return %c0_i32, %c0_i32_0, %c0_i32_1 : i32, i32, i32
  }
}

</mosaic_0001>

<bundles_post_ra>
// kernel: conv_bn_relu_2d.1
= control target key start
LH: loop header
LB: loop body
LE: loop exit
PB: predicated region body
PF: predicated region fallthrough
CT: control target
= control target key end

     0   :  { %v38_v0 = vlaneseq  ;;  %v936_v2 = vmov 1966171168   ;;  %s938_s22 = smov 126   ;;  %s939_s23 = smov 127   ;;  %vm1436_vm0 = vcmask 1039360   ;;  %vm1435_vm1 = vcmask 1040384   ;;  %s1429_s0 = inlined_call_operand.vmem [shape: bf16[2,1,384], index: 0, kind: input, shape index: {}]   ;;  %s1430_s1 = inlined_call_operand.vmem [shape: bf16[24,9], index: 1, kind: input, shape index: {}]   ;;  %s1431_s2 = inlined_call_operand.vmem [shape: f32[1,512], index: 2, kind: input, shape index: {}]   ;;  %s1432_s3 = inlined_call_operand.vmem [shape: f32[24,1], index: 3, kind: input, shape index: {}]   ;;  %s1433_s4 = inlined_call_operand.vmem [shape: f32[24,1], index: 4, kind: input, shape index: {}]   ;;  %s1434_s5 = inlined_call_operand.vmem [shape: f32[2,24,256], index: 5, kind: output, shape index: {}]  }
   0x1   :  { %v32_v1 = vld [vmem:[%s1429_s0] sm:$0x7]  ;;  %v36_v3 = vunpack.c.l.s4 %v936_v2  ;;  %v33_v7 = vld [vmem:[%s1429_s0 + $0x3] sm:$0x7]  ;;  %s937_s0 = smov 111   ;;  %s940_s24 = smov 112  }
   0x2   :  { %v981_v4 = vshrl.u32 %v38_v0, 7  ;;  %v80_v6 = vcombine.low %v32_v1, %v32_v1  ;;  %v301_v37 = vcombine.low %v33_v7, %v33_v7  ;;  %s941_s25 = smov 110   ;;  %s942_s26 = smov 96   ;;  %vm203_vm2 = vsmask.f32 256 }
   0x3   :  { %v37_v5 = vunpack.c.0.s8 %v36_v3  ;;  %s943_s27 = smov 95   ;;  %s944_s28 = smov 94   ;;  %vm1146_vm3 = vmand %vm1435_vm1, %vm203_vm2  ;;  %vm122_vm4 = vcmask 916480   ;;  %vm216_vm5 = vcmask 1041408   ;;  %vm217_vm6 = vsmask.f32 1280 }
   0x4   :  { %vm110_vm7 = vcmask 1031168   ;;  %vm142_vm8 = vcmask 908288   ;;  %vm1163_vm9 = vmand %vm216_vm5, %vm217_vm6  ;;  %vm154_vm10 = vcmask 900096   ;;  %vm174_vm11 = vcmask 785408  }
   0x5   :  { %v987_v8 = vsub.s32 %v37_v5, %v981_v4  ;;  %vm230_vm12 = vcmask 1042432   ;;  %vm231_vm13 = vsmask.f32 2304  ;;  %vm186_vm14 = vcmask 777216  }
   0x6   :  { %vm244_vm15 = vcmask 1043456   ;;  %vm245_vm2 = vsmask.f32 3328  ;;  %vm1179_vm6 = vmand %vm230_vm12, %vm231_vm13 }
   0x7   :  { %v41_v9 = vrot.slane %v32_v1, %v987_v8  ;;  %v991_v10 = vrot.slane %v80_v6, %v987_v8  ;;  %v994_v11 = vrot.slane %v33_v7, %v987_v8  ;;  %v308_v44 = vrot.slane %v301_v37, %v987_v8  ;;  %vm1194_vm13 = vmand %vm244_vm15, %vm245_vm2 }
   0x8   :  { %vm1445_vm2 = vcmask 1040384  }
   0x9   :  { %v997_v12 = vrot.slane %v41_v9, %v987_v8  ;;  %v95_v13 = vrot.slane %v991_v10, %v987_v8  ;;  %v88_v14 = vcombine.high %v991_v10, %v991_v10  ;;  %v42_v15 = vcombine.high %v41_v9, %v41_v9 }
   0xa   :  { %v264_v16 = vcombine.high %v994_v11, %v994_v11  ;;  %v1007_v17 = vrot.slane %v994_v11, %v987_v8  ;;  %v127_v26 = vcombine.low %v41_v9, %v41_v9  ;;  %v316_v47 = vrot.slane %v308_v44, %v987_v8 }
   0xb   :  { %138 = vrot.lane.b32.xlu1 %v997_v12, %s937_s0  ;;  %104 = vrot.lane.b32.xlu0 %v95_v13, %s938_s22  ;;  %v102_v18 = vrot.slane %v88_v14, %v987_v8  ;;  %v1014_v19 = vrot.slane %v42_v15, %v987_v8  ;;  %v59_v20 = vcombine.high %v997_v12, %v997_v12  ;;  %v1029_v25 = vshll.u32 %v997_v12, 16 }
   0xc   :  { %v1019_v21 = vrot.slane %v264_v16, %v987_v8  ;;  %v281_v22 = vcombine.high %v1007_v17, %v1007_v17  ;;  %v103_v29 = vcombine.high %v95_v13, %v95_v13  ;;  %v1038_v30 = vshll.u32 %v1007_v17, 16 }
   0xd   :  { %v1024_v23 = vshll.u32 %v1014_v19, 16  ;;  %v1026_v24 = vshll.u32 %v59_v20, 16  ;;  %v134_v33 = vrot.slane %v127_v26, %v987_v8  ;;  %v113_v39 = vrot.slane %v1029_v25, 7 }
   0xe   :  { %v1032_v27 = vshll.u32 %v1019_v21, 16  ;;  %v1040_v31 = vshll.u32 %v281_v22, 16  ;;  %v309_v48 = vcombine.high %v308_v44, %v308_v44  ;;  %v324_v49 = vcombine.high %v316_v47, %v316_v47 }
   0xf   :  { %106 = vrot.lane.b32.xlu1 %v102_v18, %s938_s22  ;;  %v864_v28 = vpack.i.bf16 %v1026_v24, %v1024_v23  ;;  %v114_v35 = vrot.slane %v1024_v23, 7  ;;  %v115_v36 = vrot.slane %v1026_v24, 7  ;;  %v135_v38 = vcombine.high %v134_v33, %v134_v33 }
  0x10   :  { %v869_v32 = vpack.i.bf16 %v1032_v27, %v1029_v25  ;;  %v874_v34 = vpack.i.bf16 %v1038_v30, %v1040_v31  ;;  %v334_v40 = vrot.slane %v1032_v27, 7  ;;  %v146_v42 = vrot.slane %v1024_v23, 6 }
  0x11   :  { %865 = vrot.lane.b32.xlu0 %v864_v28, %s939_s23  ;;  %v879_v41 = vpack.i.bf16 %v115_v36, %v114_v35  ;;  %v147_v43 = vrot.slane %v1026_v24, 6  ;;  %v323_v50 = vrot.slane %v309_v48, %v987_v8  ;;  %v145_v51 = vrot.slane %v1029_v25, 6 }
  0x12   :  { %v884_v45 = vpack.i.bf16 %v334_v40, %v113_v39  ;;  %v364_v52 = vrot.slane %v1032_v27, 6  ;;  %v159_v53 = vcombine.low %v991_v10, %v991_v10  ;;  %v333_v57 = vrot.slane %v1038_v30, 7 }
  0x13   :  { %108 = vrot.lane.b32.xlu1 %v103_v29, %s938_s22  ;;  %v889_v46 = vpack.i.bf16 %v147_v43, %v146_v42  ;;  %v335_v58 = vrot.slane %v1040_v31, 7  ;;  %v178_v60 = vrot.slane %v1024_v23, 5  ;;  %v179_v61 = vrot.slane %v1026_v24, 5 }
  0x14   :  { %v894_v54 = vpack.i.bf16 %v364_v52, %v145_v51  ;;  %v166_v55 = vrot.slane %v159_v53, %v987_v8  ;;  %v346_v62 = vcombine.low %v994_v11, %v994_v11  ;;  %v177_v63 = vrot.slane %v1029_v25, 5 }
  0x15   :  { %870 = vrot.lane.b32.xlu0 %v869_v32, %s939_s23  ;;  %v899_v59 = vpack.i.bf16 %v333_v57, %v335_v58  ;;  %v394_v0 = vrot.slane %v1032_v27, 5  ;;  %v904_v1 = vpack.i.bf16 %v179_v61, %v178_v60  ;;  %v363_v6 = vrot.slane %v1038_v30, 6 }
  0x16   :  { %v167_v56 = vcombine.high %v166_v55, %v166_v55  ;;  %v353_v2 = vrot.slane %v346_v62, %v987_v8  ;;  %v365_v7 = vrot.slane %v1040_v31, 6  ;;  %v192_v9 = vcombine.low %v1014_v19, %v1014_v19 }
  0x17   :  { %875 = vrot.lane.b32.xlu1 %v874_v34, %s939_s23  ;;  %v909_v3 = vpack.i.bf16 %v394_v0, %v177_v63  ;;  %v376_v11 = vcombine.low %v308_v44, %v308_v44  ;;  %v393_v16 = vrot.slane %v1038_v30, 5  ;;  %v395_v18 = vrot.slane %v1040_v31, 5 }
  0x18   :  { %v354_v5 = vcombine.high %v353_v2, %v353_v2  ;;  %v914_v10 = vpack.i.bf16 %v363_v6, %v365_v7  ;;  %v945_v20 = vmov 0   ;;  %v406_v23 = vcombine.low %v1007_v17, %v1007_v17 }
  0x19   :  { %140 = vrot.lane.b32.xlu0 %v135_v38, %s937_s0  ;;  %v383_v14 = vrot.slane %v376_v11, %v987_v8  ;;  %515 = vmatprep.mubr.bf16.mxu0 %v945_v20  ;;  %v407_v8 = vcombine.low %v1019_v21, %v1019_v21  ;;  %v919_v22 = vpack.i.bf16 %v393_v16, %v395_v18  ;;  %v946_v7 = vmov 65535  }
  0x1a   :  { %566 = vmatprep.mubr.bf16.mxu1 %v945_v20  ;;  %924 = vset.pattern.permute.xlu1 %v945_v20 }
  0x1b   :  { %880 = vrot.lane.b32.xlu1 %v879_v41, %s940_s24  ;;  %v384_v15 = vcombine.high %v383_v14, %v383_v14  ;;  %925 = vset.pattern.permute.xlu0 %v945_v20 }
  0x1d   :  { %885 = vrot.lane.b32.xlu0 %v884_v45, %s940_s24 }
  0x1f   :  { %890 = vrot.lane.b32.xlu1 %v889_v46, %s941_s25 }
  0x21   :  { %136 = vrot.lane.b32.xlu0 %v134_v33, %s937_s0 }
  0x23   :  { %329 = vrot.lane.b32.xlu1 %v324_v49, %s938_s22 }
  0x25   :  { %327 = vrot.lane.b32.xlu0 %v323_v50, %s938_s22 }
  0x27   :  { %170 = vrot.lane.b32.xlu1 %v95_v13, %s942_s26  ;;  %v191_v13 = vcombine.low %v997_v12, %v997_v12 }
  0x29   :  { %895 = vrot.lane.b32.xlu0 %v894_v54, %s941_s25 }
  0x2b   :  { %325 = vrot.lane.b32.xlu1 %v316_v47, %s938_s22 }
  0x2d   :  { %172 = vrot.lane.b32.xlu0 %v167_v56, %s942_s26 }
  0x2f   :  { %168 = vrot.lane.b32.xlu1 %v166_v55, %s942_s26 }
  0x31   :  { %900 = vrot.lane.b32.xlu0 %v899_v59, %s940_s24 }
  0x33   :  { %357 = vrot.lane.b32.xlu1 %v1007_v17, %s937_s0 }
  0x35   :  { %905 = vrot.lane.b32.xlu0 %v904_v1, %s943_s27 }
  0x37   :  { %910 = vrot.lane.b32.xlu1 %v909_v3, %s943_s27 }
  0x39   :  { %359 = vrot.lane.b32.xlu0 %v354_v5, %s937_s0 }
  0x3b   :  { %197 = vrot.lane.b32.xlu1 %v997_v12, %s944_s28 }
  0x3d   :  { %195 = vrot.lane.b32.xlu0 %v192_v9, %s944_s28  ;;  %v473_v9 = vsel %vm244_vm15, 4294967295, %v946_v7 }
  0x3f   :  { %915 = vrot.lane.b32.xlu1 %v914_v10, %s941_s25 }
  0x41   :  { %355 = vrot.lane.b32.xlu0 %v353_v2, %s937_s0  ;;  %v929_v2 = vld [vmem:[%s1430_s1 + $0x8] ss:$0 sps:$4 sm:$0xff]  }
  0x43   :  { %387 = vrot.lane.b32.xlu1 %v316_v47, %s942_s26 }
  0x45   :  { %193 = vrot.lane.b32.xlu0 %v191_v13, %s944_s28 }
  0x47   :  { %385 = vrot.lane.b32.xlu1 %v383_v14, %s942_s26  ;;  %v947_v14 = vmov 0.0  }
  0x49   :  { %389 = vrot.lane.b32.xlu0 %v384_v15, %s942_s26 }
  0x4b   :  { %410 = vrot.lane.b32.xlu1 %v407_v8, %s944_s28 }
  0x4d   :  { %920 = vrot.lane.b32.xlu0 %v919_v22, %s943_s27 }
  0x4f   :  { %408 = vrot.lane.b32.xlu1 %v406_v23, %s944_s28 }
  0x51   :  { %412 = vrot.lane.b32.xlu0 %v1007_v17, %s944_s28 }
  0x7d   :  { %v1114_v24 = vpop.permute.xlu1 %138  ;;  %v1116_v25 = vpop.permute.xlu0 %104 }
  0x81   :  { %v1118_v26 = vpop.permute.xlu1 %106 }
  0x83   :  { %v866_v27 = vpop.permute.xlu0 %865 }
  0x84   :  { %v868_v41 = vunpack.i.h.bf16 %v866_v27  ;;  %v867_v42 = vunpack.i.l.bf16 %v866_v27 }
  0x85   :  { %v109_v28 = vpop.permute.xlu1 %108 }
  0x86   :  { %v77_v45 = vsel %vm1436_vm0, %v867_v42, %v868_v41  ;;  %v112_v51 = vsel %vm110_vm7, %v1118_v26, %v109_v28  ;;  %v111_v28 = vsel %vm110_vm7, %v1116_v25, %v1118_v26 }
  0x87   :  { %v1120_v29 = vpop.permute.xlu0 %870  ;;  %v206_v52 = vsel %vm1146_vm3, %v1014_v19, %v77_v45 }
  0x88   :  { %v872_v53 = vunpack.i.l.bf16 %v1120_v29  ;;  %v214_v19 = vsel %vm1435_vm1, %v206_v52, %v112_v51  ;;  %vm472_vm1 = vcmask 1044480   ;;  %v873_v51 = vunpack.i.h.bf16 %v1120_v29 }
  0x89   :  { %v1122_v30 = vpop.permute.xlu1 %875  ;;  %v1206_v27 = vsel %vm472_vm1, %v473_v9, 0  ;;  %vm1446_vm1 = vcmask 1039360  }
  0x8a   :  { %v76_v63 = vsel %vm1436_vm0, %v872_v53, %v867_v42  ;;  %vm199_vm0 = vcmask 769024   ;;  %v878_v26 = vunpack.i.h.bf16 %v1122_v30  ;;  %v877_v53 = vunpack.i.l.bf16 %v1122_v30 }
  0x8b   :  { %v141_v31 = vpop.permute.xlu0 %140  ;;  %v205_v15 = vsel %vm1146_vm3, %v997_v12, %v76_v63 }
  0x8c   :  { %v144_v5 = vsel %vm142_vm8, %v1114_v24, %v141_v31 }
  0x8d   :  { %v1124_v32 = vpop.permute.xlu1 %880 }
  0x8e   :  { %v883_v47 = vunpack.i.h.bf16 %v1124_v32  ;;  %v882_v48 = vunpack.i.l.bf16 %v1124_v32  ;;  %v210_v32 = vsel %vm1445_vm2, %v205_v15, %v111_v28  ;;  %vm1447_vm2 = vmmov %vm1446_vm1 }
  0x8f   :  { %v1126_v33 = vpop.permute.xlu0 %885 }
  0x90   :  { %v124_v55 = vsel %vm122_vm4, %v882_v48, %v883_v47  ;;  %v887_v0 = vunpack.i.l.bf16 %v1126_v33  ;;  %v888_v29 = vunpack.i.h.bf16 %v1126_v33 }
  0x91   :  { %v1128_v34 = vpop.permute.xlu1 %890  ;;  %v220_v62 = vsel %vm1163_vm9, %v214_v19, %v124_v55 }
  0x92   :  { %v893_v56 = vunpack.i.h.bf16 %v1128_v34  ;;  %v892_v57 = vunpack.i.l.bf16 %v1128_v34  ;;  %v228_v10 = vsel %vm216_vm5, %v220_v62, %v144_v5  ;;  %v123_v18 = vsel %vm122_vm4, %v887_v0, %v882_v48 }
  0x93   :  { %v1130_v35 = vpop.permute.xlu0 %136  ;;  %v219_v45 = vsel %vm1163_vm9, %v210_v32, %v123_v18  ;;  %v298_v62 = vsel %vm1447_vm2, %v873_v51, %v877_v53  ;;  %vm465_vm2 = vcmask 72704  }
  0x94   :  { %v156_v1 = vsel %vm154_vm10, %v892_v57, %v893_v56 }
  0x95   :  { %v1132_v36 = vpop.permute.xlu1 %329  ;;  %v234_v16 = vsel %vm1179_vm6, %v228_v10, %v156_v1 }
  0x97   :  { %v1134_v37 = vpop.permute.xlu0 %327 }
  0x98   :  { %v332_v7 = vsel %vm110_vm7, %v1134_v37, %v1132_v36  ;;  %v417_v36 = vsel %vm1146_vm3, %v1019_v21, %v298_v62 }
  0x99   :  { %v1136_v38 = vpop.permute.xlu1 %170 }
  0x9b   :  { %v1138_v39 = vpop.permute.xlu0 %895 }
  0x9c   :  { %v897_v8 = vunpack.i.l.bf16 %v1138_v39  ;;  %v898_v9 = vunpack.i.h.bf16 %v1138_v39 }
  0x9d   :  { %v1140_v40 = vpop.permute.xlu1 %325 }
  0x9e   :  { %v155_v47 = vsel %vm154_vm10, %v897_v8, %v892_v57  ;;  %v331_v30 = vsel %vm110_vm7, %v1140_v40, %v1134_v37 }
  0x9f   :  { %v173_v43 = vpop.permute.xlu0 %172 }
  0xa0   :  { %v176_v6 = vsel %vm174_vm11, %v1136_v38, %v173_v43  ;;  %v143_v43 = vsel %vm142_vm8, %v1130_v35, %v1114_v24 }
  0xa1   :  { %v1142_v44 = vpop.permute.xlu1 %168  ;;  %v242_v22 = vsel %vm230_vm12, %v234_v16, %v176_v6  ;;  %v224_v24 = vsel %vm216_vm5, %v219_v45, %v143_v43 }
  0xa2   :  { %v175_v52 = vsel %vm174_vm11, %v1142_v44, %v1136_v38  ;;  %v233_v57 = vsel %vm1179_vm6, %v224_v24, %v155_v47 }
  0xa3   :  { %v1152_v49 = vpop.permute.xlu0 %900  ;;  %v238_v19 = vsel %vm230_vm12, %v233_v57, %v175_v52 }
  0xa4   :  { %v903_v35 = vunpack.i.h.bf16 %v1152_v49  ;;  %v902_v44 = vunpack.i.l.bf16 %v1152_v49 }
  0xa5   :  { %v1154_v50 = vpop.permute.xlu1 %357 }
  0xa6   :  { %v342_v63 = vsel %vm122_vm4, %v903_v35, %v888_v29  ;;  %v593_v35 = vsub.s32 1, %v981_v4 }
  0xa7   :  { %v906_v58 = vpop.permute.xlu0 %905 }
  0xa8   :  { %v908_v59 = vunpack.i.h.bf16 %v906_v58  ;;  %v907_v60 = vunpack.i.l.bf16 %v906_v58  ;;  %v297_v58 = vsel %vm1446_vm1, %v878_v26, %v873_v51  ;;  %vm1448_vm1 = vcmask 1040384  }
  0xa9   :  { %v1171_v61 = vpop.permute.xlu1 %910  ;;  %v416_v5 = vsel %vm1146_vm3, %v1007_v17, %v297_v58  ;;  %v343_v17 = vsel %vm122_vm4, %v888_v29, %v902_v44  ;;  %vm1449_vm7 = vmmov %vm1448_vm1  ;;  %vm25_vm3 = vcmask 7168  }
  0xaa   :  { %v188_v13 = vsel %vm186_vm14, %v907_v60, %v908_v59  ;;  %v912_v34 = vunpack.i.l.bf16 %v1171_v61  ;;  %v420_v10 = vsel %vm1448_vm1, %v416_v5, %v331_v30  ;;  %v424_v8 = vsel %vm1449_vm7, %v417_v36, %v332_v7  ;;  %26 = vst.msk [vmem:[#allocation2] sm:$0xff] %vm25_vm3, %v947_v14  ;;  %27 = vst.msk [vmem:[#allocation2 + $0x8] sm:$0xff] %vm25_vm3, %v947_v14 }
  0xab   :  { %v1183_v3 = vpop.permute.xlu0 %359  ;;  %v248_v12 = vsel %vm1194_vm13, %v242_v22, %v188_v13  ;;  %v928_v13 = vld [vmem:[%s1430_s1] sm:$0xff]   ;;  %v426_v15 = vsel %vm1163_vm9, %v420_v10, %v342_v63  ;;  %v913_v28 = vunpack.i.h.bf16 %v1171_v61  ;;  %v427_v21 = vsel %vm1163_vm9, %v424_v8, %v343_v17  ;;  %28 = vst.msk [vmem:[#allocation2 + $0x10] sm:$0xff] %vm25_vm3, %v947_v14  ;;  %29 = vst.msk [vmem:[#allocation3] sm:$0xff] %vm25_vm3, %v947_v14 }
  0xac   :  { %v187_v55 = vsel %vm186_vm14, %v912_v34, %v907_v60  ;;  %v362_v37 = vsel %vm142_vm8, %v1154_v50, %v1183_v3  ;;  %30 = vst.msk [vmem:[#allocation3 + $0x8] sm:$0xff] %vm25_vm3, %v947_v14  ;;  %31 = vst.msk [vmem:[#allocation3 + $0x10] sm:$0xff] %vm25_vm3, %v947_v14  ;;  %v597_v5 = vsub.s32 2, %v981_v4 }
  0xad   :  { %v198_v11 = vpop.permute.xlu1 %197  ;;  %v247_v60 = vsel %vm1194_vm13, %v238_v19, %v187_v55 }
  0xaf   :  { %v196_v23 = vpop.permute.xlu0 %195 }
  0xb0   :  { %v201_v31 = vsel %vm199_vm0, %v196_v23, %v198_v11 }
  0xb1   :  { %v916_v41 = vpop.permute.xlu1 %915  ;;  %v255_v42 = vsel %vm244_vm15, %v248_v12, %v201_v31 }
  0xb2   :  { %v477_v25 = vand.u32 %v1206_v27, %v255_v42  ;;  %v918_v0 = vunpack.i.h.bf16 %v916_v41  ;;  %v917_v40 = vunpack.i.l.bf16 %v916_v41 }
  0xb3   :  { %v356_v48 = vpop.permute.xlu0 %355 }
  0xb4   :  { %483 = vmatprep.subr.bf16.mxu0 %v477_v25  ;;  %v361_v49 = vsel %vm142_vm8, %v356_v48, %v1154_v50  ;;  %v372_v39 = vsel %vm154_vm10, %v918_v0, %v898_v9  ;;  %v373_v22 = vsel %vm154_vm10, %v898_v9, %v917_v40  ;;  %v434_v50 = vsel %vm216_vm5, %v427_v21, %v362_v37 }
  0xb5   :  { %v388_v56 = vpop.permute.xlu1 %387  ;;  %v430_v16 = vsel %vm216_vm5, %v426_v15, %v361_v49  ;;  %v437_v54 = vsel %vm1179_vm6, %v434_v50, %v373_v22  ;;  %v601_v49 = vsub.s32 3, %v981_v4 }
  0xb6   :  { %v436_v3 = vsel %vm1179_vm6, %v430_v16, %v372_v39 }
  0xb7   :  { %v194_v38 = vpop.permute.xlu0 %193 }
  0xb8   :  { %v200_v59 = vsel %vm199_vm0, %v194_v38, %v196_v23 }
  0xb9   :  { %v386_v33 = vpop.permute.xlu1 %385  ;;  %v252_v1 = vsel %vm244_vm15, %v247_v60, %v200_v59 }
  0xba   :  { %v475_v6 = vand.u32 %v1206_v27, %v252_v1  ;;  %v391_v23 = vsel %vm174_vm11, %v386_v33, %v388_v56 }
  0xbb   :  { %v390_v11 = vpop.permute.xlu0 %389  ;;  %v440_v34 = vsel %vm230_vm12, %v436_v3, %v391_v23 }
  0xbc   :  { %484 = vmatpush1.bf16.msra.mxu0 %v475_v6  ;;  %v392_v46 = vsel %vm174_vm11, %v388_v56, %v390_v11 }
  0xbd   :  { %v411_v18 = vpop.permute.xlu1 %410  ;;  %v444_v41 = vsel %vm230_vm12, %v437_v54, %v392_v46 }
  0xbf   :  { %v921_v31 = vpop.permute.xlu0 %920  ;;  %842 = vmatmul.mubr.msk.bf16.vlgmr.msra.gmra.mrb[0].mxu0 %vm465_vm2, %v928_v13 }
  0xc0   :  { %v923_v12 = vunpack.i.h.bf16 %v921_v31  ;;  %v922_v32 = vunpack.i.l.bf16 %v921_v31  ;;  %525 = vmatprep.mubr.bf16.mxu0 %v945_v20 }
  0xc1   :  { %v409_v61 = vpop.permute.xlu1 %408 }
  0xc2   :  { %v402_v42 = vsel %vm186_vm14, %v923_v12, %v913_v28  ;;  %v414_v43 = vsel %vm199_vm0, %v409_v61, %v411_v18  ;;  %v403_v45 = vsel %vm186_vm14, %v913_v28, %v922_v32 }
  0xc3   :  { %v413_v25 = vpop.permute.xlu0 %412  ;;  %v447_v26 = vsel %vm1194_vm13, %v444_v41, %v403_v45  ;;  %v446_v47 = vsel %vm1194_vm13, %v440_v34, %v402_v42 }
  0xc4   :  { %v415_v48 = vsel %vm199_vm0, %v411_v18, %v413_v25  ;;  %v450_v51 = vsel %vm244_vm15, %v446_v47, %v414_v43 }
  0xc5   :  { %v453_v52 = vsel %vm244_vm15, %v447_v26, %v415_v48  ;;  %v479_v24 = vand.u32 %v1206_v27, %v450_v51 }
  0xc6   :  { %v481_v53 = vand.u32 %v1206_v27, %v453_v52  ;;  %v589_v27 = vsub.s32 0, %v981_v4 }
  0xc7   :  { %843 = vmatmul.mubr.msk.bf16.gmra.mrb[4].mxu0 %vm465_vm2, %v929_v2 }
  0xc8   :  { %534 = vmatprep.subr.bf16.mxu1 %v481_v53 }
  0xc9   :  { %535 = vmatpush1.bf16.msra.mxu1 %v479_v24 }
  0xcc   :  { %844 = vmatmul.mubr.msk.bf16.vlgmr.msra.gmra.mrb[0].mxu1 %vm465_vm2, %v928_v13 }
  0xcd   :  { %576 = vmatprep.mubr.bf16.mxu1 %v945_v20  ;;  %v585_v20 = vld [vmem:[%s1431_s2] sm:$0xf] }
  0xce   :  { %v590_v55 = vrot.slane %v585_v20, %v589_v27  ;;  %v594_v56 = vrot.slane %v585_v20, %v593_v35  ;;  %v598_v11 = vrot.slane %v585_v20, %v597_v5  ;;  %v602_v15 = vrot.slane %v585_v20, %v601_v49 }
  0xd4   :  { %845 = vmatmul.mubr.msk.bf16.gmra.mrb[4].mxu1 %vm465_vm2, %v929_v2 }
 0x192   :  { %v1319_v57 = vpop.f32.mrb[0].mxu0 }
 0x193   :  { %v607_v58 = vmul.f32 %v590_v55, %v1319_v57  ;;  %v1322_v29 = vpop.f32.mrb[1].mxu0 }
 0x194   :  { %v608_v19 = vmul.f32 %v594_v56, %v1322_v29  ;;  %v1325_v38 = vpop.f32.mrb[2].mxu0 }
 0x195   :  { %v647_v30 = vmul.f32 %v607_v58, %v607_v58  ;;  %v611_v44 = vmul.f32 %v590_v55, %v1325_v38  ;;  %v1328_v59 = vpop.f32.mrb[3].mxu0 }
 0x196   :  { %v622_v60 = vadd.f32 %v608_v19, %v607_v58  ;;  %v648_v62 = vmul.f32 %v608_v19, %v608_v19  ;;  %v612_v63 = vmul.f32 %v594_v56, %v1328_v59  ;;  %v620_v58 = vld [vmem:[#allocation2 + $0x8] sm:$0xff] }
 0x197   :  { %v651_v0 = vmul.f32 %v611_v44, %v611_v44 }
 0x198   :  { %v627_v33 = vadd.f32 %v612_v63, %v611_v44  ;;  %v652_v1 = vmul.f32 %v612_v63, %v612_v63  ;;  %v659_v40 = vadd.f32 %v648_v62, %v647_v30  ;;  %v644_v44 = vld [vmem:[#allocation3] sm:$0xff]  ;;  %v645_v63 = vld [vmem:[#allocation3 + $0x8] sm:$0xff] }
 0x19a   :  { %v1333_v6 = vpop.f32.mrb[4].mxu0  ;;  %v664_v7 = vadd.f32 %v652_v1, %v651_v0  ;;  %v621_v1 = vld [vmem:[#allocation2 + $0x10] sm:$0xff] }
 0x19b   :  { %v615_v9 = vmul.f32 %v590_v55, %v1333_v6  ;;  %v1336_v10 = vpop.f32.mrb[5].mxu0  ;;  %v619_v55 = vld [vmem:[#allocation2] sm:$0xff] }
 0x19c   :  { %v616_v13 = vmul.f32 %v594_v56, %v1336_v10  ;;  %v531_v17 = vpop.f32.mrb[6].mxu0 }
 0x19d   :  { %v655_v36 = vmul.f32 %v615_v9, %v615_v9  ;;  %v532_v37 = vpop.f32.mrb[7].mxu0 }
 0x19e   :  { %v632_v39 = vadd.f32 %v616_v13, %v615_v9  ;;  %v656_v16 = vmul.f32 %v616_v13, %v616_v13 }
 0x19f   :  { %v1339_v18 = vpop.f32.mrb[0].mxu1 }
 0x1a0   :  { %v609_v4 = vmul.f32 %v598_v11, %v1339_v18  ;;  %v1342_v8 = vpop.f32.mrb[1].mxu1  ;;  %v669_v22 = vadd.f32 %v656_v16, %v655_v36 }
 0x1a1   :  { %v610_v23 = vmul.f32 %v602_v15, %v1342_v8  ;;  %v1345_v28 = vpop.f32.mrb[2].mxu1 }
 0x1a2   :  { %v649_v21 = vmul.f32 %v609_v4, %v609_v4  ;;  %v613_v46 = vmul.f32 %v598_v11, %v1345_v28  ;;  %v1348_v31 = vpop.f32.mrb[3].mxu1  ;;  %v623_v50 = vadd.f32 %v622_v60, %v609_v4 }
 0x1a3   :  { %v614_v3 = vmul.f32 %v602_v15, %v1348_v31  ;;  %v650_v12 = vmul.f32 %v610_v23, %v610_v23 }
 0x1a4   :  { %v653_v32 = vmul.f32 %v613_v46, %v613_v46  ;;  %v624_v34 = vadd.f32 %v623_v50, %v610_v23  ;;  %v628_v54 = vadd.f32 %v627_v33, %v613_v46  ;;  %v660_v61 = vadd.f32 %v659_v40, %v649_v21 }
 0x1a5   :  { %v654_v41 = vmul.f32 %v614_v3, %v614_v3 }
 0x1a6   :  { %625 = vadd.xlane.f32.xlu0 %v624_v34  ;;  %v629_v42 = vadd.f32 %v628_v54, %v614_v3  ;;  %v661_v43 = vadd.f32 %v660_v61, %v650_v12  ;;  %v665_v45 = vadd.f32 %v664_v7, %v653_v32  ;;  %v646_v7 = vld [vmem:[#allocation3 + $0x10] sm:$0xff] }
 0x1a7   :  { %v1351_v25 = vpop.f32.mrb[4].mxu1 }
 0x1a8   :  { %v617_v26 = vmul.f32 %v598_v11, %v1351_v25  ;;  %630 = vadd.xlane.f32.xlu1 %v629_v42  ;;  %v1354_v47 = vpop.f32.mrb[5].mxu1  ;;  %v666_v2 = vadd.f32 %v665_v45, %v654_v41 }
 0x1a9   :  { %v618_v48 = vmul.f32 %v602_v15, %v1354_v47  ;;  %v582_v51 = vpop.f32.mrb[6].mxu1 }
 0x1aa   :  { %v657_v52 = vmul.f32 %v617_v26, %v617_v26  ;;  %662 = vadd.xlane.f32.xlu0 %v661_v43  ;;  %v583_v53 = vpop.f32.mrb[7].mxu1  ;;  %v633_v24 = vadd.f32 %v632_v39, %v617_v26  ;;  %v725_v51 = vld [vmem:[%s1432_s3 + $0x8] sm:$0xff] }
 0x1ab   :  { %v658_v14 = vmul.f32 %v618_v48, %v618_v48 }
 0x1ac   :  { %667 = vadd.xlane.f32.xlu1 %v666_v2  ;;  %v634_v27 = vadd.f32 %v633_v24, %v618_v48  ;;  %v670_v20 = vadd.f32 %v669_v22, %v657_v52  ;;  %v724_v2 = vld [vmem:[%s1432_s3] sm:$0xff] }
 0x1ad   :  { %v736_v24 = vld [vmem:[%s1433_s4] sm:$0xff] }
 0x1ae   :  { %635 = vadd.xlane.f32.xlu0 %v634_v27  ;;  %v671_v35 = vadd.f32 %v670_v20, %v658_v14 }
 0x1b2   :  { %672 = vadd.xlane.f32.xlu0 %v671_v35 }
 0x233   :  { %v626_v56 = vpop.xlane.xlu0 %625 }
 0x234   :  { %v637_v19 = vadd.f32 %v626_v56, %v619_v55  ;;  %v737_v55 = vld [vmem:[%s1433_s4 + $0x8] sm:$0xff]  ;;  %v726_v56 = vld [vmem:[%s1432_s3 + $0x10] sm:$0xff] }
 0x235   :  { %v631_v30 = vpop.xlane.xlu1 %630 }
 0x236   :  { %641 = vst.msk [vmem:[#allocation2] sm:$0xff] %vm25_vm3, %v637_v19  ;;  %v638_v60 = vadd.f32 %v631_v30, %v620_v58 }
 0x237   :  { %v663_v62 = vpop.xlane.xlu0 %662 }
 0x238   :  { %642 = vst.msk [vmem:[#allocation2 + $0x8] sm:$0xff] %vm25_vm3, %v638_v60  ;;  %v674_v0 = vadd.f32 %v663_v62, %v644_v44  ;;  %v738_v60 = vld [vmem:[%s1433_s4 + $0x10] sm:$0xff] }
 0x239   :  { %v668_v33 = vpop.xlane.xlu1 %667 }
 0x23a   :  { %677 = vst.msk [vmem:[#allocation3] sm:$0xff] %vm25_vm3, %v674_v0  ;;  %v675_v5 = vadd.f32 %v668_v33, %v645_v63 }
 0x23b   :  { %v636_v40 = vpop.xlane.xlu0 %635 }
 0x23c   :  { %678 = vst.msk [vmem:[#allocation3 + $0x8] sm:$0xff] %vm25_vm3, %v675_v5  ;;  %v639_v49 = vadd.f32 %v636_v40, %v621_v1 }
 0x23d   :  { %v703_v9 = vld [vmem:[#allocation2] sm:$0xff] }
 0x23e   :  { %643 = vst.msk [vmem:[#allocation2 + $0x10] sm:$0xff] %vm25_vm3, %v639_v49  ;;  %v706_v11 = vmul.f32 0.0025510204, %v703_v9 }
 0x23f   :  { %v673_v13 = vpop.xlane.xlu0 %672  ;;  %v704_v17 = vld [vmem:[#allocation2 + $0x8] sm:$0xff] }
 0x240   :  { %v676_v15 = vadd.f32 %v673_v13, %v646_v7  ;;  %v707_v36 = vmul.f32 0.0025510204, %v704_v17  ;;  %v715_v16 = vmul.f32 %v706_v11, %v706_v11 }
 0x241   :  { %v709_v37 = vld [vmem:[#allocation3] sm:$0xff] }
 0x242   :  { %679 = vst.msk [vmem:[#allocation3 + $0x10] sm:$0xff] %vm25_vm3, %v676_v15  ;;  %v712_v39 = vmul.f32 0.0025510204, %v709_v37  ;;  %v716_v21 = vmul.f32 %v707_v36, %v707_v36 }
 0x243   :  { %v710_v4 = vld [vmem:[#allocation3 + $0x8] sm:$0xff] }
 0x244   :  { %v718_v22 = vsub.f32 %v712_v39, %v715_v16  ;;  %v713_v23 = vmul.f32 0.0025510204, %v710_v4 }
 0x245   :  { %v705_v46 = vld [vmem:[#allocation2 + $0x10] sm:$0xff] }
 0x246   :  { %v721_v50 = vmax.f32 %v718_v22, 0.0  ;;  %v719_v3 = vsub.f32 %v713_v23, %v716_v21  ;;  %v708_v12 = vmul.f32 0.0025510204, %v705_v46 }
 0x248   :  { %v727_v32 = vadd.f32 1e-05, %v721_v50  ;;  %v722_v34 = vmax.f32 %v719_v3, 0.0  ;;  %v717_v54 = vmul.f32 %v708_v12, %v708_v12 }
 0x249   :  { %v711_v61 = vld [vmem:[#allocation3 + $0x10] sm:$0xff] }
 0x24a   :  { %930 = vrsqrt.f32 %v727_v32  ;;  %v728_v41 = vadd.f32 1e-05, %v722_v34  ;;  %v714_v42 = vmul.f32 0.0025510204, %v711_v61 }
 0x24c   :  { %932 = vrsqrt.f32 %v728_v41  ;;  %v720_v43 = vsub.f32 %v714_v42, %v717_v54 }
 0x24e   :  { %v723_v45 = vmax.f32 %v720_v43, 0.0 }
 0x250   :  { %v729_v26 = vadd.f32 1e-05, %v723_v45 }
 0x252   :  { %934 = vrsqrt.f32 %v729_v26 }
 0x254   :  { %v931_v48 = vpop.eup %930 }
 0x255   :  { %v733_v52 = vmul.f32 %v931_v48, %v724_v2 }
 0x256   :  { %v933_v53 = vpop.eup %932 }
 0x257   :  { %759 = vperm.xlu1 %924, %v733_v52   ;;  %v734_v14 = vmul.f32 %v933_v53, %v725_v51  ;;  %v739_v27 = vmul.f32 %v733_v52, %v706_v11 }
 0x259   :  { %764 = vperm.xlu0 %925, %v734_v14   ;;  %v742_v20 = vsub.f32 %v736_v24, %v739_v27  ;;  %v740_v35 = vmul.f32 %v734_v14, %v707_v36 }
 0x25b   :  { %786 = vperm.xlu1 %924, %v742_v20   ;;  %v743_v19 = vsub.f32 %v737_v55, %v740_v35 }
 0x25c   :  { %v935_v58 = vpop.eup %934 }
 0x25d   :  { %v735_v30 = vmul.f32 %v935_v58, %v726_v56 }
 0x25f   :  { %791 = vperm.xlu1 %924, %v743_v19   ;;  %v741_v44 = vmul.f32 %v735_v30, %v708_v12 }
 0x261   :  { %v744_v62 = vsub.f32 %v738_v60, %v741_v44 }
 0x263   :  { %769 = vperm.xlu1 %924, %v735_v30  }
 0x267   :  { %796 = vperm.xlu1 %924, %v744_v62  }
 0x2d6   :  { %v760_v63 = vpop.permute.xlu1 %759 }
 0x2d7   :  { %v772_v0 = vmul.f32 %v760_v63, %v1319_v57  ;;  %v773_v33 = vmul.f32 %v760_v63, %v1322_v29  ;;  %v778_v1 = vmul.f32 %v760_v63, %v1339_v18  ;;  %v779_v5 = vmul.f32 %v760_v63, %v1342_v8 }
 0x2d8   :  { %v765_v40 = vpop.permute.xlu0 %764 }
 0x2d9   :  { %v774_v17 = vmul.f32 %v765_v40, %v1325_v38  ;;  %v775_v15 = vmul.f32 %v765_v40, %v1328_v59  ;;  %v780_v36 = vmul.f32 %v765_v40, %v1345_v28  ;;  %v781_v57 = vmul.f32 %v765_v40, %v1348_v31 }
 0x2da   :  { %v787_v49 = vpop.permute.xlu1 %786 }
 0x2db   :  { %v799_v7 = vadd.f32 %v787_v49, %v772_v0  ;;  %v800_v9 = vadd.f32 %v787_v49, %v773_v33  ;;  %v805_v11 = vadd.f32 %v787_v49, %v778_v1  ;;  %v806_v13 = vadd.f32 %v787_v49, %v779_v5 }
 0x2dd   :  { %v811_v37 = vmax.f32 %v799_v7, 0.0  ;;  %v812_v29 = vmax.f32 %v800_v9, 0.0  ;;  %v817_v39 = vmax.f32 %v805_v11, 0.0  ;;  %v818_v18 = vmax.f32 %v806_v13, 0.0 }
 0x2de   :  { %v792_v16 = vpop.permute.xlu1 %791 }
 0x2df   :  { %823 = vst [vmem:[%s1434_s5] sm:$0xff] %v811_v37  ;;  %824 = vst [vmem:[%s1434_s5 + $0x8] sm:$0xff] %v812_v29  ;;  %v801_v38 = vadd.f32 %v792_v16, %v774_v17  ;;  %v802_v59 = vadd.f32 %v792_v16, %v775_v15  ;;  %v807_v8 = vadd.f32 %v792_v16, %v780_v36 }
 0x2e0   :  { %829 = vst [vmem:[%s1434_s5 + $0x30] sm:$0xff] %v817_v39  ;;  %830 = vst [vmem:[%s1434_s5 + $0x38] sm:$0xff] %v818_v18  ;;  %v808_v28 = vadd.f32 %v792_v16, %v781_v57 }
 0x2e1   :  { %v813_v31 = vmax.f32 %v801_v38, 0.0  ;;  %v814_v4 = vmax.f32 %v802_v59, 0.0  ;;  %v819_v22 = vmax.f32 %v807_v8, 0.0 }
 0x2e2   :  { %v820_v23 = vmax.f32 %v808_v28, 0.0  ;;  %v770_v21 = vpop.permute.xlu1 %769 }
 0x2e3   :  { %825 = vst [vmem:[%s1434_s5 + $0x10] sm:$0xff] %v813_v31  ;;  %826 = vst [vmem:[%s1434_s5 + $0x18] sm:$0xff] %v814_v4  ;;  %v776_v46 = vmul.f32 %v770_v21, %v1333_v6  ;;  %v777_v50 = vmul.f32 %v770_v21, %v1336_v10  ;;  %v782_v3 = vmul.f32 %v770_v21, %v1351_v25 }
 0x2e4   :  { %831 = vst [vmem:[%s1434_s5 + $0x40] sm:$0xff] %v819_v22  ;;  %832 = vst [vmem:[%s1434_s5 + $0x48] sm:$0xff] %v820_v23  ;;  %v783_v12 = vmul.f32 %v770_v21, %v1354_v47 }
 0x2e6   :  { %v797_v32 = vpop.permute.xlu1 %796 }
 0x2e7   :  { %v803_v34 = vadd.f32 %v797_v32, %v776_v46  ;;  %v804_v54 = vadd.f32 %v797_v32, %v777_v50  ;;  %v809_v61 = vadd.f32 %v797_v32, %v782_v3  ;;  %v810_v41 = vadd.f32 %v797_v32, %v783_v12 }
 0x2e9   :  { %v815_v42 = vmax.f32 %v803_v34, 0.0  ;;  %v816_v43 = vmax.f32 %v804_v54, 0.0  ;;  %v821_v45 = vmax.f32 %v809_v61, 0.0  ;;  %v822_v26 = vmax.f32 %v810_v41, 0.0 }
 0x2eb   :  { %827 = vst [vmem:[%s1434_s5 + $0x20] sm:$0xff] %v815_v42  ;;  %828 = vst [vmem:[%s1434_s5 + $0x28] sm:$0xff] %v816_v43 }
 0x2ec   :  { %833 = vst [vmem:[%s1434_s5 + $0x50] sm:$0xff] %v821_v45  ;;  %834 = vst [vmem:[%s1434_s5 + $0x58] sm:$0xff] %v822_v26 }

</bundles_post_ra>
